<compile_context>
chip_gen: v7x
topology: tpu7x:2x2x1
jax: 0.10.0
libtpu: 0.0.40
codegen_flags: <defaults>
</compile_context>

<pallas_src>
import functools

import jax
import jax.numpy as jnp
from jax.experimental import pallas as pl
from jax.experimental.pallas import tpu as pltpu


def _round_up(x, m):
    return ((x + m - 1) // m) * m


def _pgnet_kernel(x_ref, w1_ref, b1_ref, w2_ref, b2_ref, w3_ref, b3_ref, o_ref):
    """Fused forward pass for one (block_b, *) batch tile.

    All three matmuls hit the MXU with f32 accumulation; ReLU is VPU, and the
    sigmoid is exp (EUP) + approximate reciprocal (EUP).
    """
    x = x_ref[...]

    # fc1 + ReLU
    h1 = jnp.dot(x, w1_ref[...], preferred_element_type=jnp.float32) + b1_ref[...]
    h1 = jnp.maximum(h1, 0.0)

    # fc2 + ReLU
    h2 = jnp.dot(h1.astype(w2_ref.dtype), w2_ref[...],
                 preferred_element_type=jnp.float32) + b2_ref[...]
    h2 = jnp.maximum(h2, 0.0)

    # fc3 + sigmoid (1 / (1 + exp(-z)) with the divide on the EUP slot).
    logits = jnp.dot(h2.astype(w3_ref.dtype), w3_ref[...],
                     preferred_element_type=jnp.float32) + b3_ref[...]
    o_ref[...] = pl.reciprocal(1.0 + jnp.exp(-logits), approx=True).astype(o_ref.dtype)


def _vmem_limit_bytes(block_b, in_dim, hid_pad, out_pad):
    """Generous f32 estimate: double-buffered I/O tiles + resident params + live values."""
    f32 = 4
    io_tiles = 2 * block_b * in_dim + 2 * block_b * out_pad
    weights = 2 * (in_dim * hid_pad + hid_pad * hid_pad + hid_pad * out_pad
                   + 2 * hid_pad + out_pad)
    live = 4 * block_b * hid_pad          # h1 / h2 / logits / temporaries
    est = (io_tiles + weights + live) * f32
    return int(min(max(2 * est, 32 * 1024 * 1024), 64 * 1024 * 1024))


@functools.partial(jax.jit, static_argnames=("block_b", "use_bf16"))
def pgnet_forward(x, params, block_b=512, use_bf16=False):
    """Run PGNet forward via pallas_call.

    x: (B, input_dim) float32
    params: dict with w1 (in,hid), b1 (1,hid), w2 (hid,hid), b2 (1,hid),
            w3 (hid,out), b3 (1,out)
    """
    w1, b1 = params["w1"], params["b1"]
    w2, b2 = params["w2"], params["b2"]
    w3, b3 = params["w3"], params["b3"]

    B, input_dim = x.shape
    hidden_dim = w1.shape[1]
    output_dim = w3.shape[1]

    # Lane-dense padding: hidden / output widths become multiples of 128 so
    # intermediate vregs are full and the output store is unmasked.  The pad
    # columns of W / b are zero, so the math is exact; pads are sliced off
    # below.  Compute cost is unchanged (still one MXU tile per matmul).
    hid_pad = _round_up(hidden_dim, 128)
    out_pad = _round_up(output_dim, 128)

    w1p = jnp.pad(w1, ((0, 0), (0, hid_pad - hidden_dim)))
    b1p = jnp.pad(b1, ((0, 0), (0, hid_pad - hidden_dim)))
    w2p = jnp.pad(w2, ((0, hid_pad - hidden_dim), (0, hid_pad - hidden_dim)))
    b2p = jnp.pad(b2, ((0, 0), (0, hid_pad - hidden_dim)))
    w3p = jnp.pad(w3, ((0, hid_pad - hidden_dim), (0, out_pad - output_dim)))
    b3p = jnp.pad(b3, ((0, 0), (0, out_pad - output_dim)))

    if use_bf16:
        # Halves the dominant streaming (x) HBM traffic on v6e/v7x; f32
        # accumulation is kept via preferred_element_type inside the kernel.
        # Biases stay f32 so the bias add happens in f32.
        x = x.astype(jnp.bfloat16)
        w1p, w2p, w3p = (w.astype(jnp.bfloat16) for w in (w1p, w2p, w3p))

    # Batch tiling: large tiles amortise per-grid-step overhead; when the
    # whole batch would fit in one tile but is big enough, split it in two so
    # both v7x TensorCores get a block (no-op cost on v5e/v6e).
    bb = _round_up(B, 8)
    if bb > block_b:
        bb = block_b
    elif bb >= 16:
        bb = max(8, _round_up(pl.cdiv(B, 2), 8))

    grid = (pl.cdiv(B, bb),)

    # Weights / biases are small: resident full arrays for every batch tile.
    full = lambda a: pl.BlockSpec(a.shape, lambda i: (0,) * a.ndim)

    out = pl.pallas_call(
        _pgnet_kernel,
        out_shape=jax.ShapeDtypeStruct((B, out_pad), jnp.float32),
        grid_spec=pltpu.PrefetchScalarGridSpec(
            num_scalar_prefetch=0,
            grid=grid,
            in_specs=[
                pl.BlockSpec((bb, input_dim), lambda i: (i, 0)),  # x batch tile
                full(w1p), full(b1p),
                full(w2p), full(b2p),
                full(w3p), full(b3p),
            ],
            out_specs=pl.BlockSpec((bb, out_pad), lambda i: (i, 0)),
        ),
        compiler_params=pltpu.CompilerParams(
            dimension_semantics=("parallel",),
            vmem_limit_bytes=_vmem_limit_bytes(bb, input_dim, hid_pad, out_pad),
        ),
    )(x, w1p, b1p, w2p, b2p, w3p, b3p)

    # Drop the zero-padded output columns.
    return out[:, :output_dim]


def init_pgnet_params(key, input_dim, output_dim, hidden_dim=128):
    """Deterministic init mimicking nn.Linear default (uniform +- 1/sqrt(fan_in)).

    Weights are stored transposed: (in_features, out_features).
    """
    ks = jax.random.split(key, 6)

    def linear(kw, kb, fan_in, fan_out):
        bound = 1.0 / jnp.sqrt(fan_in)
        w = jax.random.uniform(kw, (fan_in, fan_out), jnp.float32, -bound, bound)
        b = jax.random.uniform(kb, (1, fan_out), jnp.float32, -bound, bound)
        return w, b

    w1, b1 = linear(ks[0], ks[1], input_dim, hidden_dim)
    w2, b2 = linear(ks[2], ks[3], hidden_dim, hidden_dim)
    w3, b3 = linear(ks[4], ks[5], hidden_dim, output_dim)
    return {"w1": w1, "b1": b1, "w2": w2, "b2": b2, "w3": w3, "b3": b3}


def pgnet_reference(x, params):
    """Pure-JAX reference for correctness checking."""
    h1 = jax.nn.relu(x @ params["w1"] + params["b1"])
    h2 = jax.nn.relu(h1 @ params["w2"] + params["b2"])
    return jax.nn.sigmoid(h2 @ params["w3"] + params["b3"])


if __name__ == "__main__":
    key = jax.random.PRNGKey(0)
    k_x, k_p = jax.random.split(key)

    # Small shapes consistent with the module: batch=8 states of dim 4,
    # hidden=32, action dim=2.
    batch, input_dim, hidden_dim, output_dim = 8, 4, 32, 2

    x = jax.random.normal(k_x, (batch, input_dim), jnp.float32)
    params = init_pgnet_params(k_p, input_dim, output_dim, hidden_dim)

    out = pgnet_forward(x, params)
    out = jax.block_until_ready(out)

    ref = pgnet_reference(x, params)
    assert out.shape == (batch, output_dim), out.shape
    # The sigmoid epilogue uses the hardware approximate reciprocal (~2^-12
    # relative); sigmoid outputs lie in (0, 1), so 1e-3 tolerance has ample margin.
    err = jnp.max(jnp.abs(out - ref))
    assert jnp.allclose(out, ref, atol=1e-3, rtol=1e-3), f"max abs err = {err}"

    print("KERNEL_OK")
</pallas_src>

<mosaic_0001>
module attributes {stable_mosaic.version = 11 : i64} {
  func.func @_pgnet_kernel(%arg0: i32, %arg1: memref<8x4xf32, #tpu.memory_space<vmem>>, %arg2: memref<4x128xf32, #tpu.memory_space<vmem>>, %arg3: memref<1x128xf32, #tpu.memory_space<vmem>>, %arg4: memref<128x128xf32, #tpu.memory_space<vmem>>, %arg5: memref<1x128xf32, #tpu.memory_space<vmem>>, %arg6: memref<128x128xf32, #tpu.memory_space<vmem>>, %arg7: memref<1x128xf32, #tpu.memory_space<vmem>>, %arg8: memref<8x128xf32, #tpu.memory_space<vmem>>) attributes {dimension_semantics = [#tpu.dimension_semantics<parallel>], iteration_bounds = array<i64: 1>, scalar_prefetch = 0 : i64, scratch_operands = 0 : i64, tpu.core_type = #tpu.core_type<tc>, window_params = [{transform_indices = @transform_0, window_bounds = array<i64: 8, 4>}, {pipeline_mode = #tpu.pipeline_mode<synchronous>, transform_indices = @transform_1, window_bounds = array<i64: 4, 128>}, {pipeline_mode = #tpu.pipeline_mode<synchronous>, transform_indices = @transform_2, window_bounds = array<i64: 1, 128>}, {pipeline_mode = #tpu.pipeline_mode<synchronous>, transform_indices = @transform_3, window_bounds = array<i64: 128, 128>}, {pipeline_mode = #tpu.pipeline_mode<synchronous>, transform_indices = @transform_4, window_bounds = array<i64: 1, 128>}, {pipeline_mode = #tpu.pipeline_mode<synchronous>, transform_indices = @transform_5, window_bounds = array<i64: 128, 128>}, {pipeline_mode = #tpu.pipeline_mode<synchronous>, transform_indices = @transform_6, window_bounds = array<i64: 1, 128>}, {transform_indices = @transform_7, window_bounds = array<i64: 8, 128>}]} {
    %c0 = arith.constant 0 : index
    %c0_0 = arith.constant 0 : index
    %0 = vector.load %arg1[%c0, %c0_0] : memref<8x4xf32, #tpu.memory_space<vmem>>, vector<8x4xf32>
    %c0_1 = arith.constant 0 : index
    %c0_2 = arith.constant 0 : index
    %1 = vector.load %arg2[%c0_1, %c0_2] : memref<4x128xf32, #tpu.memory_space<vmem>>, vector<4x128xf32>
    %cst = arith.constant dense<0.000000e+00> : vector<8x128xf32>
    %2 = tpu.matmul %0, %1, %cst {dimension_numbers = #tpu.dot_dimension_numbers<[1], [0], [0], [1], [0, 0, 1, 1], [], []>} : vector<8x4xf32>, vector<4x128xf32>, vector<8x128xf32> -> vector<8x128xf32>
    %c0_3 = arith.constant 0 : index
    %c0_4 = arith.constant 0 : index
    %3 = vector.load %arg3[%c0_3, %c0_4] : memref<1x128xf32, #tpu.memory_space<vmem>>, vector<1x128xf32>
    %4 = vector.broadcast %3 : vector<1x128xf32> to vector<8x128xf32>
    %5 = arith.addf %2, %4 : vector<8x128xf32>
    %cst_5 = arith.constant 0.000000e+00 : f32
    %6 = vector.broadcast %cst_5 : f32 to vector<8x128xf32>
    %7 = arith.maximumf %5, %6 : vector<8x128xf32>
    %c0_6 = arith.constant 0 : index
    %c0_7 = arith.constant 0 : index
    %8 = vector.load %arg4[%c0_6, %c0_7] : memref<128x128xf32, #tpu.memory_space<vmem>>, vector<128x128xf32>
    %cst_8 = arith.constant dense<0.000000e+00> : vector<8x128xf32>
    %9 = tpu.matmul %7, %8, %cst_8 {dimension_numbers = #tpu.dot_dimension_numbers<[1], [0], [0], [1], [0, 0, 1, 1], [], []>} : vector<8x128xf32>, vector<128x128xf32>, vector<8x128xf32> -> vector<8x128xf32>
    %c0_9 = arith.constant 0 : index
    %c0_10 = arith.constant 0 : index
    %10 = vector.load %arg5[%c0_9, %c0_10] : memref<1x128xf32, #tpu.memory_space<vmem>>, vector<1x128xf32>
    %11 = vector.broadcast %10 : vector<1x128xf32> to vector<8x128xf32>
    %12 = arith.addf %9, %11 : vector<8x128xf32>
    %cst_11 = arith.constant 0.000000e+00 : f32
    %13 = vector.broadcast %cst_11 : f32 to vector<8x128xf32>
    %14 = arith.maximumf %12, %13 : vector<8x128xf32>
    %c0_12 = arith.constant 0 : index
    %c0_13 = arith.constant 0 : index
    %15 = vector.load %arg6[%c0_12, %c0_13] : memref<128x128xf32, #tpu.memory_space<vmem>>, vector<128x128xf32>
    %cst_14 = arith.constant dense<0.000000e+00> : vector<8x128xf32>
    %16 = tpu.matmul %14, %15, %cst_14 {dimension_numbers = #tpu.dot_dimension_numbers<[1], [0], [0], [1], [0, 0, 1, 1], [], []>} : vector<8x128xf32>, vector<128x128xf32>, vector<8x128xf32> -> vector<8x128xf32>
    %c0_15 = arith.constant 0 : index
    %c0_16 = arith.constant 0 : index
    %17 = vector.load %arg7[%c0_15, %c0_16] : memref<1x128xf32, #tpu.memory_space<vmem>>, vector<1x128xf32>
    %18 = vector.broadcast %17 : vector<1x128xf32> to vector<8x128xf32>
    %19 = arith.addf %16, %18 : vector<8x128xf32>
    %cst_17 = arith.constant 0.000000e+00 : f32
    %20 = vector.broadcast %cst_17 : f32 to vector<8x128xf32>
    %21 = arith.subf %20, %19 : vector<8x128xf32>
    %22 = math.exp %21 : vector<8x128xf32>
    %cst_18 = arith.constant 1.000000e+00 : f32
    %23 = vector.broadcast %cst_18 : f32 to vector<8x128xf32>
    %24 = arith.addf %23, %22 : vector<8x128xf32>
    %25 = tpu.reciprocal %24 {approx = true} : vector<8x128xf32> -> vector<8x128xf32>
    %c0_19 = arith.constant 0 : index
    %c0_20 = arith.constant 0 : index
    %26 = vector.load %arg8[%c0_19, %c0_20] : memref<8x128xf32, #tpu.memory_space<vmem>>, vector<8x128xf32>
    tpu.vector_store %arg8[%c0_19, %c0_20], %25 {strides = array<i32>} : memref<8x128xf32, #tpu.memory_space<vmem>>, vector<8x128xf32>,
    return
  }
  func.func @transform_0(%arg0: i32) -> (i32, i32) {
    %c0_i32 = arith.constant 0 : i32
    %c0_i32_0 = arith.constant 0 : i32
    return %arg0, %c0_i32 : i32, i32
  }
  func.func @transform_1(%arg0: i32) -> (i32, i32) {
    %c0_i32 = arith.constant 0 : i32
    %c0_i32_0 = arith.constant 0 : i32
    %c0_i32_1 = arith.constant 0 : i32
    return %c0_i32, %c0_i32_0 : i32, i32
  }
  func.func @transform_2(%arg0: i32) -> (i32, i32) {
    %c0_i32 = arith.constant 0 : i32
    %c0_i32_0 = arith.constant 0 : i32
    %c0_i32_1 = arith.constant 0 : i32
    return %c0_i32, %c0_i32_0 : i32, i32
  }
  func.func @transform_3(%arg0: i32) -> (i32, i32) {
    %c0_i32 = arith.constant 0 : i32
    %c0_i32_0 = arith.constant 0 : i32
    %c0_i32_1 = arith.constant 0 : i32
    return %c0_i32, %c0_i32_0 : i32, i32
  }
  func.func @transform_4(%arg0: i32) -> (i32, i32) {
    %c0_i32 = arith.constant 0 : i32
    %c0_i32_0 = arith.constant 0 : i32
    %c0_i32_1 = arith.constant 0 : i32
    return %c0_i32, %c0_i32_0 : i32, i32
  }
  func.func @transform_5(%arg0: i32) -> (i32, i32) {
    %c0_i32 = arith.constant 0 : i32
    %c0_i32_0 = arith.constant 0 : i32
    %c0_i32_1 = arith.constant 0 : i32
    return %c0_i32, %c0_i32_0 : i32, i32
  }
  func.func @transform_6(%arg0: i32) -> (i32, i32) {
    %c0_i32 = arith.constant 0 : i32
    %c0_i32_0 = arith.constant 0 : i32
    %c0_i32_1 = arith.constant 0 : i32
    return %c0_i32, %c0_i32_0 : i32, i32
  }
  func.func @transform_7(%arg0: i32) -> (i32, i32) {
    %c0_i32 = arith.constant 0 : i32
    %c0_i32_0 = arith.constant 0 : i32
    return %arg0, %c0_i32 : i32, i32
  }
}

</mosaic_0001>

<bundles_post_ra>
// kernel: pgnet_forward.1
= control target key start
LH: loop header
LB: loop body
LE: loop exit
PB: predicated region body
PF: predicated region fallthrough
CT: control target
= control target key end

     0   :  { %vm39_vm0 = vcmask 1043456   ;;  %vm35_vm1 = vcmask 31744   ;;  %v482_v0 = vmov 0.0   ;;  %vm483_vm2 = vmmov 0   ;;  %s655_s1 = inlined_call_operand.vmem [shape: f32[4,128], index: 1, kind: input, shape index: {}]   ;;  %s656_s0 = inlined_call_operand.vmem [shape: f32[8,4], index: 0, kind: input, shape index: {}]   ;;  %s657_s3 = inlined_call_operand.vmem [shape: f32[128,128], index: 3, kind: input, shape index: {}]   ;;  %s658_s5 = inlined_call_operand.vmem [shape: f32[128,128], index: 5, kind: input, shape index: {}]   ;;  %s659_s2 = inlined_call_operand.vmem [shape: f32[1,128], index: 2, kind: input, shape index: {}]   ;;  %s660_s4 = inlined_call_operand.vmem [shape: f32[1,128], index: 4, kind: input, shape index: {}]   ;;  %s661_s6 = inlined_call_operand.vmem [shape: f32[1,128], index: 6, kind: input, shape index: {}]   ;;  %s662_s7 = inlined_call_operand.vmem [shape: f32[8,128], index: 7, kind: output, shape index: {}]  }
   0x1   :  { %352 = vmatprep.subr.mxu0 %v482_v0  ;;  %v27_v1 = vld [vmem:[%s655_s1] sm:$0xf]  ;;  %354 = vmatprep.mubr.msk.f32.mxu0 %vm483_vm2, %v482_v0  ;;  %v484_v4 = vmov 0.0|0.0   ;;  %v115_v5 = vld [vmem:[%s657_s3 + $0x8] sm:$0xff]  ;;  %v116_v6 = vld [vmem:[%s657_s3 + $0x10] sm:$0xff] }
   0x2   :  { %v26_v2 = vld [vmem:[%s656_s0] sm:$0xff]  ;;  %353 = vmatpush3.msk.msra.mxu0 %vm39_vm0, %v27_v1  ;;  %427 = vmatprep.subr.bf16.mxu1 %v484_v4  ;;  %v117_v7 = vld [vmem:[%s657_s3 + $0x18] sm:$0xff]  ;;  %v119_v11 = vld [vmem:[%s657_s3 + $0x28] sm:$0xff] }
   0x3   :  { %v114_v3 = vld [vmem:[%s657_s3] sm:$0xff]  ;;  %355 = vmatmul.mubr.msk.f32.vlgmr.msra.gmra.mrb[0].mxu0 %vm35_vm1, %v26_v2  ;;  %389 = vmatprep.mubr.msk.f32.mxu1 %vm483_vm2, %v482_v0  ;;  %v431_v9 = vpack.c.bf16 %v117_v7, %v116_v6  ;;  %v120_v13 = vld [vmem:[%s657_s3 + $0x30] sm:$0xff]  ;;  %v121_v14 = vld [vmem:[%s657_s3 + $0x38] sm:$0xff] }
   0x4   :  { %v428_v8 = vpack.c.bf16 %v115_v5, %v114_v3  ;;  %451 = vmatprep.subr.bf16.mxu0 %v484_v4  ;;  %424 = vmatprep.mubr.msk.f32.mxu0 %vm483_vm2, %v482_v0  ;;  %v118_v10 = vld [vmem:[%s657_s3 + $0x20] sm:$0xff]  ;;  %v437_v15 = vpack.c.bf16 %v121_v14, %v120_v13  ;;  %v123_v17 = vld [vmem:[%s657_s3 + $0x48] sm:$0xff]  ;;  %v124_v19 = vld [vmem:[%s657_s3 + $0x50] sm:$0xff] }
   0x5   :  { %v434_v12 = vpack.c.bf16 %v119_v11, %v118_v10  ;;  %v122_v16 = vld [vmem:[%s657_s3 + $0x40] sm:$0xff]  ;;  %v125_v20 = vld [vmem:[%s657_s3 + $0x58] sm:$0xff]  ;;  %v127_v23 = vld [vmem:[%s657_s3 + $0x68] sm:$0xff] }
   0x6   :  { %429 = vmatpush3.bf16.msra.mxu1 %v428_v8  ;;  %v440_v18 = vpack.c.bf16 %v123_v17, %v122_v16  ;;  %v443_v21 = vpack.c.bf16 %v125_v20, %v124_v19  ;;  %v126_v22 = vld [vmem:[%s657_s3 + $0x60] sm:$0xff]  ;;  %v128_v25 = vld [vmem:[%s657_s3 + $0x70] sm:$0xff]  ;;  %v129_v26 = vld [vmem:[%s657_s3 + $0x78] sm:$0xff] }
   0x7   :  { %430 = vmatprep.subr.bf16.mxu1 %v484_v4  ;;  %v446_v24 = vpack.c.bf16 %v127_v23, %v126_v22  ;;  %v449_v27 = vpack.c.bf16 %v129_v26, %v128_v25  ;;  %v208_v28 = vld [vmem:[%s658_s5] sm:$0xff]  ;;  %v209_v29 = vld [vmem:[%s658_s5 + $0x8] sm:$0xff]  ;;  %v210_v30 = vld [vmem:[%s658_s5 + $0x10] sm:$0xff] }
   0x8   :  { %v452_v31 = vpack.c.bf16 %v209_v29, %v208_v28  ;;  %v211_v32 = vld [vmem:[%s658_s5 + $0x18] sm:$0xff]  ;;  %v212_v34 = vld [vmem:[%s658_s5 + $0x20] sm:$0xff]  ;;  %v213_v35 = vld [vmem:[%s658_s5 + $0x28] sm:$0xff] }
   0x9   :  { %v455_v33 = vpack.c.bf16 %v211_v32, %v210_v30  ;;  %v458_v36 = vpack.c.bf16 %v213_v35, %v212_v34  ;;  %v214_v37 = vld [vmem:[%s658_s5 + $0x30] sm:$0xff]  ;;  %v215_v38 = vld [vmem:[%s658_s5 + $0x38] sm:$0xff]  ;;  %v216_v40 = vld [vmem:[%s658_s5 + $0x40] sm:$0xff] }
   0xa   :  { %432 = vmatpush3.bf16.msra.mxu1 %v431_v9  ;;  %453 = vmatpush3.bf16.msra.mxu0 %v452_v31  ;;  %v461_v39 = vpack.c.bf16 %v215_v38, %v214_v37  ;;  %v217_v41 = vld [vmem:[%s658_s5 + $0x48] sm:$0xff]  ;;  %v218_v43 = vld [vmem:[%s658_s5 + $0x50] sm:$0xff]  ;;  %v219_v44 = vld [vmem:[%s658_s5 + $0x58] sm:$0xff] }
   0xb   :  { %433 = vmatprep.subr.bf16.mxu1 %v484_v4  ;;  %454 = vmatprep.subr.bf16.mxu0 %v484_v4  ;;  %v464_v42 = vpack.c.bf16 %v217_v41, %v216_v40  ;;  %v467_v45 = vpack.c.bf16 %v219_v44, %v218_v43  ;;  %v220_v46 = vld [vmem:[%s658_s5 + $0x60] sm:$0xff]  ;;  %v221_v47 = vld [vmem:[%s658_s5 + $0x68] sm:$0xff]  ;;  %v222_v54 = vld [vmem:[%s658_s5 + $0x70] sm:$0xff] }
   0xc   :  { %v470_v48 = vpack.c.bf16 %v221_v47, %v220_v46  ;;  %v311_v49 = vld [vmem:[%s659_s2] ss:$0 sm:$0xff]  ;;  %v223_v55 = vld [vmem:[%s658_s5 + $0x78] sm:$0xff] }
   0xd   :  { %v473_v56 = vpack.c.bf16 %v223_v55, %v222_v54  ;;  %v314_v57 = vld [vmem:[%s660_s4] ss:$0 sm:$0xff] }
   0xe   :  { %435 = vmatpush3.bf16.msra.mxu1 %v434_v12  ;;  %456 = vmatpush3.bf16.msra.mxu0 %v455_v33  ;;  %v315_v62 = vld [vmem:[%s661_s6] ss:$0 sm:$0xff] }
   0xf   :  { %436 = vmatprep.subr.bf16.mxu1 %v484_v4  ;;  %457 = vmatprep.subr.bf16.mxu0 %v484_v4 }
  0x12   :  { %438 = vmatpush3.bf16.msra.mxu1 %v437_v15  ;;  %459 = vmatpush3.bf16.msra.mxu0 %v458_v36 }
  0x13   :  { %439 = vmatprep.subr.bf16.mxu1 %v484_v4  ;;  %460 = vmatprep.subr.bf16.mxu0 %v484_v4 }
  0x16   :  { %441 = vmatpush3.bf16.msra.mxu1 %v440_v18  ;;  %462 = vmatpush3.bf16.msra.mxu0 %v461_v39 }
  0x17   :  { %442 = vmatprep.subr.bf16.mxu1 %v484_v4  ;;  %463 = vmatprep.subr.bf16.mxu0 %v484_v4 }
  0x1a   :  { %444 = vmatpush3.bf16.msra.mxu1 %v443_v21  ;;  %465 = vmatpush3.bf16.msra.mxu0 %v464_v42 }
  0x1b   :  { %445 = vmatprep.subr.bf16.mxu1 %v484_v4  ;;  %466 = vmatprep.subr.bf16.mxu0 %v484_v4 }
  0x1e   :  { %447 = vmatpush3.bf16.msra.mxu1 %v446_v24  ;;  %468 = vmatpush3.bf16.msra.mxu0 %v467_v45 }
  0x1f   :  { %448 = vmatprep.subr.bf16.mxu1 %v484_v4  ;;  %469 = vmatprep.subr.bf16.mxu0 %v484_v4 }
  0x22   :  { %450 = vmatpush3.bf16.msra.mxu1 %v449_v27  ;;  %471 = vmatpush3.bf16.msra.mxu0 %v470_v48 }
  0x23   :  { %472 = vmatprep.subr.bf16.mxu0 %v484_v4 }
  0x26   :  { %474 = vmatpush3.bf16.msra.mxu0 %v473_v56 }
  0xd6   :  { %v109_v50 = vpop.f32.mrb[0].mxu0 }
  0xd7   :  { %v110_v51 = vadd.f32 %v311_v49, %v109_v50  ;;  %v356_v52 = vpop.f32.mrb[1].mxu0 }
  0xd9   :  { %v113_v53 = vmax.f32 %v110_v51, 0.0 }
  0xdb   :  { %390 = vmatmul.mubr.f32.vlgmr.msra.gmra.mrb[0].mxu1 %v113_v53 }
 0x1ae   :  { %v203_v58 = vpop.f32.mrb[0].mxu1 }
 0x1af   :  { %v204_v59 = vadd.f32 %v314_v57, %v203_v58  ;;  %v391_v60 = vpop.f32.mrb[1].mxu1 }
 0x1b1   :  { %v207_v61 = vmax.f32 %v204_v59, 0.0 }
 0x1b3   :  { %425 = vmatmul.mubr.f32.vlgmr.msra.gmra.mrb[2].mxu0 %v207_v61 }
 0x286   :  { %v297_v63 = vpop.f32.mrb[2].mxu0 }
 0x287   :  { %v298_v0 = vadd.f32 %v315_v62, %v297_v63  ;;  %v426_v1 = vpop.f32.mrb[3].mxu0 }
 0x289   :  { %v301_v2 = vsub.f32 0.0, %v298_v0 }
 0x28b   :  { %v302_v3 = vmul.f32 1.442695, %v301_v2 }
 0x28d   :  { %478 = vpow2.f32 %v302_v3 }
 0x297   :  { %v479_v4 = vpop.eup %478 }
 0x298   :  { %v304_v5 = vadd.f32 1.0, %v479_v4 }
 0x29a   :  { %480 = vrcp.f32 %v304_v5 }
 0x2a4   :  { %v481_v6 = vpop.eup %480 }
 0x2a5   :  { %306 = vst [vmem:[%s662_s7] sm:$0xff] %v481_v6 }

</bundles_post_ra>
